<compile_context>
chip_gen: v7x
topology: tpu7x:2x2x1
jax: 0.10.0
libtpu: 0.0.40
codegen_flags: <defaults>
</compile_context>

<pallas_src>
import jax
import jax.numpy as jnp
from jax.experimental import pallas as pl
from jax.experimental.pallas import tpu as pltpu


_RESULT_CHUNK = 2048  # max lanes per output store; keeps the result out of the spill zone


def _linear_kernel(x_ref, w_ref, o_ref):
    # x_ref: (B, K)   full batch + full reduction dim, resident in VMEM
    # w_ref: (K, TN)  one lane-dense tile of the (K, N) weight
    # o_ref: (B, TN)  lane-dense output tile
    x = x_ref[...]
    if x.dtype != w_ref.dtype:
        x = x.astype(w_ref.dtype)          # bf16-weight path: feed the MXU natively
    tn = o_ref.shape[1]
    chunk = min(tn, _RESULT_CHUNK)
    for c in range(tn // chunk):           # static loop; each chunk is stored immediately
        sl = pl.ds(c * chunk, chunk)
        o_ref[:, sl] = jnp.dot(x, w_ref[:, sl], preferred_element_type=jnp.float32)


def prepare_weight(w_native, dtype=None):
    """One-time (outside the hot/jit path) re-layout of a PyTorch Linear weight.

    w_native: (out_features, noise_dim) -- PyTorch nn.Linear layout.
    Returns (noise_dim, out_features); optionally cast once at rest
    (e.g. dtype=jnp.bfloat16 to halve HBM traffic; kernel accumulates in f32).
    """
    w = jnp.asarray(w_native).T
    if dtype is not None:
        w = w.astype(dtype)
    return w


def _num_tensorcores():
    try:
        kind = jax.devices()[0].device_kind.lower()
    except Exception:
        return 1
    # v7x exposes 2 TensorCores per chip; v5e/v6e have 1.
    return 2 if ("v7" in kind or "7x" in kind) else 1


def _vmem_capacity_bytes():
    try:
        return int(pltpu.get_tpu_info().vmem_capacity_bytes)
    except Exception:
        return 64 << 20  # conservative fallback (v7x per-TensorCore size)


def _choose_tn(out_features, K, w_itemsize, num_tc, target_w_bytes):
    """Output tile width: 128-aligned, W-byte-targeted, >=2 steps/core on 2-TC chips."""
    if out_features % 128 != 0:
        # Small/odd configs (e.g. n_channels*cube^3 = 64): a single full block
        # is always legal (block dim == full array dim).
        return out_features
    tn = target_w_bytes // (K * w_itemsize)
    tn = max(128, (tn // 128) * 128)
    tn = min(tn, out_features)
    # On 2-TC chips give each core >= 2 tiles so prefetch of tile i+1 can hide
    # behind compute/writeback of tile i; single-TC chips keep one big step.
    min_steps = 4 if num_tc >= 2 else 1
    if min_steps > 1 and out_features >= min_steps * 128:
        tn = min(tn, max(128, ((out_features // min_steps) // 128) * 128))
    if tn >= _RESULT_CHUNK:
        tn = (tn // _RESULT_CHUNK) * _RESULT_CHUNK  # keep tn a multiple of the store chunk
    return tn


def latent_space_reshape(x, w_kn, n_channels, cube_size):
    """x: (B, noise_dim); w_kn: (noise_dim, out_features) from prepare_weight()."""
    B, K = x.shape
    K_w, out_features = w_kn.shape
    assert K_w == K
    assert out_features == n_channels * cube_size ** 3

    w_itemsize = jnp.dtype(w_kn.dtype).itemsize
    x_itemsize = jnp.dtype(x.dtype).itemsize

    vmem_cap = _vmem_capacity_bytes()
    num_tc = _num_tensorcores()

    # ~8 MiB of W per grid step: per-step DMA >> 0.35 us overhead on every
    # generation, yet tiny against every generation's VMEM when double-buffered.
    target_w_bytes = min(8 << 20, max(2 << 20, vmem_cap // 8))
    tn = _choose_tn(out_features, K, w_itemsize, num_tc, target_w_bytes)
    grid = (pl.cdiv(out_features, tn),)

    # Scoped-VMEM limit: double-buffered W tile + double-buffered output tile
    # + x, with headroom, capped generation-aware (v7x: 64 MiB physical / TC).
    needed = 2 * tn * K * w_itemsize + 2 * B * tn * 4 + 2 * B * K * x_itemsize
    vmem_limit = int(min(max(needed + needed // 2, 16 << 20), (vmem_cap * 3) // 5))
    vmem_limit = max(vmem_limit, needed + (2 << 20))

    y = pl.pallas_call(
        _linear_kernel,
        out_shape=jax.ShapeDtypeStruct((B, out_features), jnp.float32),
        grid_spec=pltpu.PrefetchScalarGridSpec(
            num_scalar_prefetch=0,
            grid=grid,
            in_specs=[
                pl.BlockSpec((B, K), lambda j: (0, 0)),    # x, resident every step
                pl.BlockSpec((K, tn), lambda j: (0, j)),   # j-th lane-dense W tile
                # TODO(synk): pipeline_mode=pl.Buffered(3) on the W spec if a trace
                # shows gaps between back-to-back W DMAs (skip on v7x if it breaks
                # the 64 MiB VMEM budget).
            ],
            out_specs=pl.BlockSpec((B, tn), lambda j: (0, j)),
        ),
        compiler_params=pltpu.CompilerParams(
            dimension_semantics=("parallel",),
            vmem_limit_bytes=vmem_limit,
        ),
    )(x, w_kn)

    # view(-1, n_channels, cube, cube, cube) -- free row-major reshape.
    return y.reshape(-1, n_channels, cube_size, cube_size, cube_size)


if __name__ == "__main__":
    # Small shapes consistent with the module.
    noise_dim = 32
    n_channels = 4
    cube_size = 4            # out_features = 4 * 4^3 = 256
    batch = 2

    key = jax.random.PRNGKey(0)
    kx, kw = jax.random.split(key)

    x = jax.random.normal(kx, (batch, noise_dim), dtype=jnp.float32)
    # Weight in native PyTorch nn.Linear layout (out_features, in_features).
    w_native = jax.random.normal(
        kw, (n_channels * cube_size ** 3, noise_dim), dtype=jnp.float32
    ) * (1.0 / jnp.sqrt(noise_dim))

    # One-time re-layout to (K, N) outside the hot path.  Pass
    # dtype=jnp.bfloat16 here to halve HBM traffic (kernel still accumulates
    # in f32); kept f32 to match the PyTorch module exactly.
    w_kn = prepare_weight(w_native)

    out = latent_space_reshape(x, w_kn, n_channels, cube_size)
    out = jax.block_until_ready(out)

    # Reference check (plain JAX) for sanity.
    ref = (x @ w_native.T).reshape(-1, n_channels, cube_size, cube_size, cube_size)
    assert out.shape == (batch, n_channels, cube_size, cube_size, cube_size)
    assert jnp.allclose(out, ref, atol=1e-4, rtol=1e-4)

    print("KERNEL_OK")
</pallas_src>

<mosaic_0001>
module attributes {stable_mosaic.version = 11 : i64} {
  func.func @_linear_kernel(%arg0: i32, %arg1: memref<2x32xf32, #tpu.memory_space<vmem>>, %arg2: memref<32x256xf32, #tpu.memory_space<vmem>>, %arg3: memref<2x256xf32, #tpu.memory_space<vmem>>) attributes {dimension_semantics = [#tpu.dimension_semantics<parallel>], iteration_bounds = array<i64: 1>, scalar_prefetch = 0 : i64, scratch_operands = 0 : i64, tpu.core_type = #tpu.core_type<tc>, window_params = [{pipeline_mode = #tpu.pipeline_mode<synchronous>, transform_indices = @transform_0, window_bounds = array<i64: 2, 32>}, {transform_indices = @transform_1, window_bounds = array<i64: 32, 256>}, {transform_indices = @transform_2, window_bounds = array<i64: 2, 256>}]} {
    %c0 = arith.constant 0 : index
    %c0_0 = arith.constant 0 : index
    %0 = vector.load %arg1[%c0, %c0_0] : memref<2x32xf32, #tpu.memory_space<vmem>>, vector<2x32xf32>
    %c0_1 = arith.constant 0 : index
    %c0_2 = arith.constant 0 : index
    %1 = vector.load %arg2[%c0_1, %c0_2] : memref<32x256xf32, #tpu.memory_space<vmem>>, vector<32x256xf32>
    %cst = arith.constant dense<0.000000e+00> : vector<2x256xf32>
    %2 = tpu.matmul %0, %1, %cst {dimension_numbers = #tpu.dot_dimension_numbers<[1], [0], [0], [1], [0, 0, 1, 1], [], []>} : vector<2x32xf32>, vector<32x256xf32>, vector<2x256xf32> -> vector<2x256xf32>
    %c0_3 = arith.constant 0 : index
    %c0_4 = arith.constant 0 : index
    %3 = vector.load %arg3[%c0_3, %c0_4] : memref<2x256xf32, #tpu.memory_space<vmem>>, vector<2x256xf32>
    tpu.vector_store %arg3[%c0_3, %c0_4], %2 {strides = array<i32>} : memref<2x256xf32, #tpu.memory_space<vmem>>, vector<2x256xf32>,
    return
  }
  func.func @transform_0(%arg0: i32) -> (i32, i32) {
    %c0_i32 = arith.constant 0 : i32
    %c0_i32_0 = arith.constant 0 : i32
    %c0_i32_1 = arith.constant 0 : i32
    return %c0_i32, %c0_i32_0 : i32, i32
  }
  func.func @transform_1(%arg0: i32) -> (i32, i32) {
    %c0_i32 = arith.constant 0 : i32
    %c0_i32_0 = arith.constant 0 : i32
    return %c0_i32, %arg0 : i32, i32
  }
  func.func @transform_2(%arg0: i32) -> (i32, i32) {
    %c0_i32 = arith.constant 0 : i32
    %c0_i32_0 = arith.constant 0 : i32
    return %c0_i32, %arg0 : i32, i32
  }
}

</mosaic_0001>

<bundles_post_ra>
// kernel: tpu_custom_call.1
= control target key start
LH: loop header
LB: loop body
LE: loop exit
PB: predicated region body
PF: predicated region fallthrough
CT: control target
= control target key end

     0   :  { %7 = vsyncpa [#allocation3], 0  ;;  %s302_s0 = inlined_call_operand.hbm [shape: f32[2,32], index: 0, kind: input, shape index: {}]   ;;  %s303_s1 = inlined_call_operand.hbm [shape: f32[32,256], index: 1, kind: input, shape index: {}]   ;;  %s304_s2 = inlined_call_operand.hbm [shape: f32[2,256], index: 2, kind: output, shape index: {}]  }
   0x1   :  { %8 = vsyncpa [#allocation6], 0 }
   0x2   :  { %9 = vsyncpa [#allocation4], 0  ;;  %s238_s9 = smov [#allocation2]   ;;  %s239_s11 = smov [#allocation5]  }
   0x3   :  { %s16_s10 = sshll.u32 %s238_s9, 4  ;;  %s25_s12 = sshll.u32 %s239_s11, 4  ;;  %s17_s10 = int_to_ptr.vmem [resolvable:$true] %s16_s10  ;;  %s259_s12 = int_to_ptr.vmem [resolvable:$true] %s25_s12 }
   0x4   :  { %s166_s15 = scalar_lea.hbm %s302_s0, 32 }
   0x5   :  { %p167_p0 = scmp.ne.s32.totalorder %s302_s0, %s166_s15  ;;  %p170_p1 = scmp.lt.u32.totalorder %s166_s15, %s302_s0 }
   0x7   :  { %p172_p2 = pnand %p170_p1, %p167_p0 }
   0x9   :  { %175 = shalt.err (!%p172_p2)
}
   0xa   :  { %s176_s20 = scalar_lea.vmem %s17_s10, 32  ;;  %p181_p4 = scmp.lt.s32.totalorder %s17_s10, %s17_s10 }
   0xb   :  { %p177_p3 = scmp.ne.s32.totalorder %s17_s10, %s176_s20  ;;  %p182_p5 = scmp.lt.s32.totalorder %s176_s20, %s176_s20 }
   0xd   :  { %p183_p6 = por %p182_p5, %p181_p4 }
   0xf   :  { %p184_p7 = pnand %p183_p6, %p177_p3 }
  0x11   :  { %187 = shalt.err (!%p184_p7)
}
  0x12   :  { %19 = dma.hbm_to_vmem [thread:$0]  %s302_s0, 32, %s17_s10, [#allocation3]  }
  0x13   :  { %s188_s25 = scalar_lea.hbm %s303_s1, 1024 }
  0x14   :  { %p189_p8 = scmp.ne.s32.totalorder %s303_s1, %s188_s25  ;;  %p192_p9 = scmp.lt.u32.totalorder %s188_s25, %s303_s1 }
  0x16   :  { %p194_p10 = pnand %p192_p9, %p189_p8 }
  0x18   :  { %197 = shalt.err (!%p194_p10)
}
  0x19   :  { %s198_s30 = scalar_lea.vmem %s259_s12, 1024  ;;  %p203_p12 = scmp.lt.s32.totalorder %s259_s12, %s259_s12 }
  0x1a   :  { %p199_p11 = scmp.ne.s32.totalorder %s259_s12, %s198_s30  ;;  %p204_p13 = scmp.lt.s32.totalorder %s198_s30, %s198_s30 }
  0x1c   :  { %p205_p0 = por %p204_p13, %p203_p12 }
  0x1e   :  { %p206_p1 = pnand %p205_p0, %p199_p11 }
  0x20   :  { %209 = shalt.err (!%p206_p1)
}
  0x21   :  { %s240_s0 = smov 256   ;;  %s241_s3 = smov 16  }
  0x22   :  { %31 = dma.hbm_to_vmem [thread:$0]  %s303_s1, 1024, %s259_s12, [#allocation6], %s240_s0, %s240_s0, %s241_s3  }
  0x23   :  { %232 = dma.done.wait [#allocation3], 32  }
  0x24   :  { %233 = vsyncadd [#allocation3], 4294967264 }
  0x25   :  { %234 = dma.done.wait [#allocation6], 1024  }
  0x26   :  { %235 = vsyncadd [#allocation6], 4294966272  ;;  %v242_v0 = vmov 0.0   ;;  %v40_v1 = vld [vmem:[#allocation5 + $0x8] sm:$0xff]  ;;  %v42_v2 = vld [vmem:[#allocation5 + $0x18] sm:$0xff]  ;;  %vm47_vm0 = vcmask 261120  }
  0x27   :  { %115 = vmatprep.mubr.f32.mxu0 %v242_v0  ;;  %v39_v3 = vld [vmem:[#allocation5] sm:$0xff]  ;;  %v152_v4 = vpack.c.bf16 %v42_v2, %v40_v1  ;;  %v41_v5 = vld [vmem:[#allocation5 + $0x10] sm:$0xff]  ;;  %v44_v6 = vld [vmem:[#allocation5 + $0x28] sm:$0xff]  ;;  %s243_s1 = smov [#allocation7]  }
  0x28   :  { %v46_v7 = vld [vmem:[#allocation5 + $0x38] sm:$0xff]  ;;  %v154_v8 = vpack.c.bf16 %v41_v5, %v39_v3  ;;  %v43_v10 = vld [vmem:[#allocation5 + $0x20] sm:$0xff]  ;;  %v45_v11 = vld [vmem:[#allocation5 + $0x30] sm:$0xff]  ;;  %s140_s6 = sshll.u32 %s243_s1, 4  ;;  %s141_s6 = int_to_ptr.vmem [resolvable:$true] %s140_s6 }
  0x29   :  { %v156_v9 = vpack.c.bf16 %v46_v7, %v44_v6  ;;  %153 = vmatprep.subr.bf16.mxu0 %v152_v4  ;;  %v158_v12 = vpack.c.bf16 %v45_v11, %v43_v10  ;;  %v38_v13 = vld [vmem:[#allocation2] sm:$0x3]  ;;  %s210_s7 = scalar_lea.vmem %s141_s6, 64  ;;  %p215_p3 = scmp.lt.s32.totalorder %s141_s6, %s141_s6 }
  0x2a   :  { %155 = vmatpush1.bf16.msra.mxu0 %v154_v8  ;;  %p211_p2 = scmp.ne.s32.totalorder %s141_s6, %s210_s7  ;;  %p216_p4 = scmp.lt.s32.totalorder %s210_s7, %s210_s7 }
  0x2b   :  { %157 = vmatprep.subr.bf16.mxu0 %v156_v9 }
  0x2c   :  { %p217_p5 = por %p216_p4, %p215_p3 }
  0x2e   :  { %159 = vmatpush1.bf16.msra.mxu0 %v158_v12  ;;  %p218_p6 = pnand %p217_p5, %p211_p2 }
  0x31   :  { %150 = vmatmul.mubr.msk.f32.vlgmr.msra.gmra.mrb[0].mxu0 %vm47_vm0, %v38_v13 }
 0x104   :  { %v117_v14 = vpop.f32.mrb[0].mxu0 }
 0x105   :  { %v119_v15 = vpop.f32.mrb[1].mxu0 }
 0x106   :  { %v124_v16 = vcombine.low %v117_v14, %v119_v15 }
 0x108   :  { %151 = vst.sshfl [vmem:[#allocation7] sm:$0x33 pattern:$0x76325410] %v124_v16 }
 0x109   :  { %221 = shalt.err (!%p218_p6)
}
 0x10a   :  { %s222_s10 = scalar_lea.hbm %s304_s2, 64 }
 0x10b   :  { %p223_p7 = scmp.ne.s32.totalorder %s304_s2, %s222_s10  ;;  %p226_p8 = scmp.lt.u32.totalorder %s222_s10, %s304_s2 }
 0x10d   :  { %p228_p9 = pnand %p226_p8, %p223_p7 }
 0x10f   :  { %231 = shalt.err (!%p228_p9)
}
 0x110   :  { %143 = dma.vmem_to_hbm [thread:$0]  %s141_s6, 64, %s304_s2, [#allocation4]  }
 0x111   :  { %236 = dma.done.wait [#allocation4], 64  }
 0x112   :  { %237 = vsyncadd [#allocation4], 4294967232 }
 0x113   :  { %147 = vsyncpa [#allocation3], 1 }
 0x114   :  { %148 = vsyncpa [#allocation6], 1 }
 0x115   :  { %149 = vsyncpa [#allocation4], 1 }

</bundles_post_ra>
